<compile_context>
chip_gen: v6e
topology: v6e:2x2x1
jax: 0.10.0
libtpu: 0.0.40
codegen_flags: <defaults>
</compile_context>

<pallas_src>
import functools

import jax
import jax.numpy as jnp
from jax.experimental import pallas as pl
from jax.experimental.pallas import tpu as pltpu


def _round_up(x: int, m: int) -> int:
    return ((x + m - 1) // m) * m


def _ppo_fused_kernel(x_ref, w1_ref, b1_ref, w2_ref, b2_ref, out_ref):
    # Layer 1, both heads fused: [TB, S] @ [S, 2H] -> [TB, 2H] (f32 accumulate).
    h = jnp.dot(x_ref[...], w1_ref[...], preferred_element_type=jnp.float32)
    # Bias + ReLU in f32 (v5e has no bf16 VALU).
    h = jnp.maximum(h + b1_ref[...], 0.0)
    # Layer 2, block-diagonal packed heads: [TB, 2H] @ [2H, 128] -> [TB, 128].
    # Single lane-dense 128-wide store instead of a 52-wide + 1-wide pair.
    out_ref[...] = (
        jnp.dot(h.astype(w2_ref.dtype), w2_ref[...],
                preferred_element_type=jnp.float32)
        + b2_ref[...]
    )


def pack_params(p, compute_dtype=jnp.bfloat16):
    """Pack actor/critic params into fused layer-1 and block-diagonal layer-2."""
    S, H = p["aw1"].shape
    A = p["aw2"].shape[1]
    out_pad = _round_up(A + 1, 128)  # 52 logits + 1 value -> 128 lanes

    w1 = jnp.concatenate([p["aw1"], p["cw1"]], axis=1)          # [S, 2H]
    b1 = jnp.concatenate([p["ab1"], p["cb1"]], axis=1)          # [1, 2H]

    w2 = jnp.zeros((2 * H, out_pad), jnp.float32)
    w2 = w2.at[:H, :A].set(p["aw2"])                            # actor block
    w2 = w2.at[H:, A:A + 1].set(p["cw2"])                       # critic column
    b2 = jnp.zeros((1, out_pad), jnp.float32)
    b2 = b2.at[:, :A].set(p["ab2"])
    b2 = b2.at[:, A:A + 1].set(p["cb2"])                        # cb2 folded in

    return {
        "w1": w1.astype(compute_dtype),
        "b1": b1,                        # biases stay f32
        "w2": w2.astype(compute_dtype),
        "b2": b2,
        "A": A,
        "out_pad": out_pad,
    }


def ppo_forward(x, packed, *, block_b: int = 512):
    """Fused actor/critic forward pass as a single Pallas kernel.

    x: [B, S] float32
    packed: output of pack_params(...)
    returns: (logits [B, A] f32, value [B, 1] f32)
    """
    B, S = x.shape
    two_h = packed["w1"].shape[1]
    out_pad = packed["w2"].shape[1]
    A = packed["A"]
    compute_dtype = packed["w1"].dtype

    # Batch tile: multiple of 8 sublanes; shard big rollout batches over the grid.
    TB = min(block_b, _round_up(B, 8))
    B_pad = _round_up(B, TB)

    xb = x.astype(compute_dtype)
    if B_pad != B:
        xb = jnp.pad(xb, ((0, B_pad - B), (0, 0)))

    out = pl.pallas_call(
        _ppo_fused_kernel,
        out_shape=jax.ShapeDtypeStruct((B_pad, out_pad), jnp.float32),
        grid=(B_pad // TB,),
        in_specs=[
            pl.BlockSpec((TB, S), lambda i: (i, 0)),
            pl.BlockSpec((S, two_h), lambda i: (0, 0)),
            pl.BlockSpec((1, two_h), lambda i: (0, 0)),
            pl.BlockSpec((two_h, out_pad), lambda i: (0, 0)),
            pl.BlockSpec((1, out_pad), lambda i: (0, 0)),
        ],
        out_specs=pl.BlockSpec((TB, out_pad), lambda i: (i, 0)),
        compiler_params=pltpu.CompilerParams(
            dimension_semantics=("parallel",)),
    )(xb, packed["w1"], packed["b1"], packed["w2"], packed["b2"])

    logits = out[:B, :A]
    value = out[:B, A:A + 1]
    return logits, value


def _xavier_uniform(key, fan_in, fan_out):
    limit = jnp.sqrt(6.0 / (fan_in + fan_out))
    return jax.random.uniform(key, (fan_in, fan_out), jnp.float32, -limit, limit)


def init_params(key, state_size, hidden, action_size):
    """Deterministic Xavier-uniform init (matching initializer='xavier_u')."""
    ks = jax.random.split(key, 4)
    return {
        "aw1": _xavier_uniform(ks[0], state_size, hidden),
        "ab1": jnp.zeros((1, hidden), jnp.float32),
        "aw2": _xavier_uniform(ks[1], hidden, action_size),
        "ab2": jnp.zeros((1, action_size), jnp.float32),
        "cw1": _xavier_uniform(ks[2], state_size, hidden),
        "cb1": jnp.zeros((1, hidden), jnp.float32),
        "cw2": _xavier_uniform(ks[3], hidden, 1),
        "cb2": jnp.zeros((1, 1), jnp.float32),
    }


def ppo_forward_ref(x, p):
    """Plain-JAX reference for correctness checking (f32 throughout)."""
    h_a = jnp.maximum(x @ p["aw1"] + p["ab1"], 0.0)
    logits = h_a @ p["aw2"] + p["ab2"]
    h_c = jnp.maximum(x @ p["cw1"] + p["cb1"], 0.0)
    value = h_c @ p["cw2"] + p["cb2"]
    return logits, value


# TODO(synk): only PPOAgent.forward is implemented; replay()/optimizers/
# Categorical sampling/state parsing are host-side training logic, not kernels.

if __name__ == "__main__":
    # Small, deterministic example shapes consistent with the module:
    #   state_size (HeartsStateParser output) = 64
    #   actor_layers = critic_layers = [32]
    #   action_size = 13 * 4 = 52 (full deck)
    B, S, H, A = 8, 64, 32, 52

    key = jax.random.PRNGKey(0)
    k_x, k_p = jax.random.split(key)
    x = jax.random.normal(k_x, (B, S), jnp.float32)
    params = init_params(k_p, S, H, A)
    ref_logits, ref_value = ppo_forward_ref(x, params)

    # --- f32 compute path: tight tolerance check of the fused-kernel math ---
    packed_f32 = pack_params(params, compute_dtype=jnp.float32)
    logits32, value32 = ppo_forward(x, packed_f32)
    jax.block_until_ready((logits32, value32))
    assert logits32.shape == (B, A) and value32.shape == (B, 1)
    assert jnp.allclose(logits32, ref_logits, atol=1e-4, rtol=1e-4)
    assert jnp.allclose(value32, ref_value, atol=1e-4, rtol=1e-4)

    # --- bf16 compute path (production config): looser tolerance ---
    packed_bf16 = pack_params(params, compute_dtype=jnp.bfloat16)
    logits, value = ppo_forward(x, packed_bf16)
    jax.block_until_ready((logits, value))
    assert logits.shape == (B, A) and value.shape == (B, 1)
    assert jnp.allclose(logits, ref_logits, atol=5e-2, rtol=5e-2)
    assert jnp.allclose(value, ref_value, atol=5e-2, rtol=5e-2)

    print("KERNEL_OK")
</pallas_src>

<mosaic_0001>
module attributes {stable_mosaic.version = 11 : i64} {
  func.func @_ppo_fused_kernel(%arg0: i32, %arg1: memref<8x64xf32, #tpu.memory_space<vmem>>, %arg2: memref<64x64xf32, #tpu.memory_space<vmem>>, %arg3: memref<1x64xf32, #tpu.memory_space<vmem>>, %arg4: memref<64x128xf32, #tpu.memory_space<vmem>>, %arg5: memref<1x128xf32, #tpu.memory_space<vmem>>, %arg6: memref<8x128xf32, #tpu.memory_space<vmem>>) attributes {dimension_semantics = [#tpu.dimension_semantics<parallel>], iteration_bounds = array<i64: 1>, scalar_prefetch = 0 : i64, scratch_operands = 0 : i64, tpu.core_type = #tpu.core_type<tc>, window_params = [{transform_indices = @transform_0, window_bounds = array<i64: 8, 64>}, {pipeline_mode = #tpu.pipeline_mode<synchronous>, transform_indices = @transform_1, window_bounds = array<i64: 64, 64>}, {pipeline_mode = #tpu.pipeline_mode<synchronous>, transform_indices = @transform_2, window_bounds = array<i64: 1, 64>}, {pipeline_mode = #tpu.pipeline_mode<synchronous>, transform_indices = @transform_3, window_bounds = array<i64: 64, 128>}, {pipeline_mode = #tpu.pipeline_mode<synchronous>, transform_indices = @transform_4, window_bounds = array<i64: 1, 128>}, {transform_indices = @transform_5, window_bounds = array<i64: 8, 128>}]} {
    %c0 = arith.constant 0 : index
    %c0_0 = arith.constant 0 : index
    %0 = vector.load %arg1[%c0, %c0_0] : memref<8x64xf32, #tpu.memory_space<vmem>>, vector<8x64xf32>
    %c0_1 = arith.constant 0 : index
    %c0_2 = arith.constant 0 : index
    %1 = vector.load %arg2[%c0_1, %c0_2] : memref<64x64xf32, #tpu.memory_space<vmem>>, vector<64x64xf32>
    %cst = arith.constant dense<0.000000e+00> : vector<8x64xf32>
    %2 = tpu.matmul %0, %1, %cst {dimension_numbers = #tpu.dot_dimension_numbers<[1], [0], [0], [1], [0, 0, 1, 1], [], []>} : vector<8x64xf32>, vector<64x64xf32>, vector<8x64xf32> -> vector<8x64xf32>
    %c0_3 = arith.constant 0 : index
    %c0_4 = arith.constant 0 : index
    %3 = vector.load %arg3[%c0_3, %c0_4] : memref<1x64xf32, #tpu.memory_space<vmem>>, vector<1x64xf32>
    %4 = vector.broadcast %3 : vector<1x64xf32> to vector<8x64xf32>
    %5 = arith.addf %2, %4 : vector<8x64xf32>
    %cst_5 = arith.constant 0.000000e+00 : f32
    %6 = vector.broadcast %cst_5 : f32 to vector<8x64xf32>
    %7 = arith.maximumf %5, %6 : vector<8x64xf32>
    %c0_6 = arith.constant 0 : index
    %c0_7 = arith.constant 0 : index
    %8 = vector.load %arg4[%c0_6, %c0_7] : memref<64x128xf32, #tpu.memory_space<vmem>>, vector<64x128xf32>
    %cst_8 = arith.constant dense<0.000000e+00> : vector<8x128xf32>
    %9 = tpu.matmul %7, %8, %cst_8 {dimension_numbers = #tpu.dot_dimension_numbers<[1], [0], [0], [1], [0, 0, 1, 1], [], []>} : vector<8x64xf32>, vector<64x128xf32>, vector<8x128xf32> -> vector<8x128xf32>
    %c0_9 = arith.constant 0 : index
    %c0_10 = arith.constant 0 : index
    %10 = vector.load %arg5[%c0_9, %c0_10] : memref<1x128xf32, #tpu.memory_space<vmem>>, vector<1x128xf32>
    %11 = vector.broadcast %10 : vector<1x128xf32> to vector<8x128xf32>
    %12 = arith.addf %9, %11 : vector<8x128xf32>
    %c0_11 = arith.constant 0 : index
    %c0_12 = arith.constant 0 : index
    %13 = vector.load %arg6[%c0_11, %c0_12] : memref<8x128xf32, #tpu.memory_space<vmem>>, vector<8x128xf32>
    tpu.vector_store %arg6[%c0_11, %c0_12], %12 {strides = array<i32>} : memref<8x128xf32, #tpu.memory_space<vmem>>, vector<8x128xf32>,
    return
  }
  func.func @transform_0(%arg0: i32) -> (i32, i32) {
    %c0_i32 = arith.constant 0 : i32
    %c0_i32_0 = arith.constant 0 : i32
    return %arg0, %c0_i32 : i32, i32
  }
  func.func @transform_1(%arg0: i32) -> (i32, i32) {
    %c0_i32 = arith.constant 0 : i32
    %c0_i32_0 = arith.constant 0 : i32
    %c0_i32_1 = arith.constant 0 : i32
    return %c0_i32, %c0_i32_0 : i32, i32
  }
  func.func @transform_2(%arg0: i32) -> (i32, i32) {
    %c0_i32 = arith.constant 0 : i32
    %c0_i32_0 = arith.constant 0 : i32
    %c0_i32_1 = arith.constant 0 : i32
    return %c0_i32, %c0_i32_0 : i32, i32
  }
  func.func @transform_3(%arg0: i32) -> (i32, i32) {
    %c0_i32 = arith.constant 0 : i32
    %c0_i32_0 = arith.constant 0 : i32
    %c0_i32_1 = arith.constant 0 : i32
    return %c0_i32, %c0_i32_0 : i32, i32
  }
  func.func @transform_4(%arg0: i32) -> (i32, i32) {
    %c0_i32 = arith.constant 0 : i32
    %c0_i32_0 = arith.constant 0 : i32
    %c0_i32_1 = arith.constant 0 : i32
    return %c0_i32, %c0_i32_0 : i32, i32
  }
  func.func @transform_5(%arg0: i32) -> (i32, i32) {
    %c0_i32 = arith.constant 0 : i32
    %c0_i32_0 = arith.constant 0 : i32
    return %arg0, %c0_i32 : i32, i32
  }
}

</mosaic_0001>

<bundles_post_ra>
// kernel: tpu_custom_call.1
= control target key start
LH: loop header
LB: loop body
LE: loop exit
PB: predicated region body
PF: predicated region fallthrough
CT: control target
= control target key end

     0   :  { %10 = vsyncpa [#allocation3], 0  ;;  %s468_s0 = inlined_call_operand.hbm [shape: f32[8,64], index: 0, kind: input, shape index: {}]   ;;  %s469_s1 = inlined_call_operand.hbm [shape: f32[64,64], index: 1, kind: input, shape index: {}]   ;;  %s470_s2 = inlined_call_operand.vmem [shape: f32[1,64], index: 2, kind: input, shape index: {}]   ;;  %s471_s3 = inlined_call_operand.hbm [shape: f32[64,128], index: 3, kind: input, shape index: {}]   ;;  %s472_s4 = inlined_call_operand.vmem [shape: f32[1,128], index: 4, kind: input, shape index: {}]   ;;  %s473_s5 = inlined_call_operand.hbm [shape: f32[8,128], index: 5, kind: output, shape index: {}]  }
   0x1   :  { %11 = vsyncpa [#allocation6], 0 }
   0x2   :  { %12 = vsyncpa [#allocation4], 0  ;;  %s410_s18 = smov [#allocation5]  }
   0x3   :  { %s28_s19 = sshll.u32 %s410_s18, 4  ;;  %s29_s19 = int_to_ptr.vmem [resolvable:$true] %s28_s19 }
   0x4   :  { %s332_s20 = scalar_lea.vmem %s29_s19, 1024  ;;  %p337_p1 = scmp.lt.s32.totalorder %s29_s19, %s29_s19 }
   0x5   :  { %p333_p0 = scmp.ne.s32.totalorder %s29_s19, %s332_s20  ;;  %p338_p2 = scmp.lt.s32.totalorder %s332_s20, %s332_s20 }
   0x7   :  { %p339_p3 = por %p338_p2, %p337_p1 }
   0x9   :  { %p340_p4 = pnand %p339_p3, %p333_p0 }
   0xb   :  { %343 = shalt.err (!%p340_p4)
}
   0xc   :  { %s411_s21 = smov 128   ;;  %s412_s22 = smov 8  }
   0xd   :  { %34 = dma.hbm_to_vmem [thread:$0]  %s469_s1, 1024, %s29_s19, [#allocation6], %s411_s21, %s411_s21, %s412_s22  }
   0xe   :  { %s413_s25 = smov [#allocation2]   ;;  %s414_s27 = smov [#allocation7]  }
   0xf   :  { %s19_s26 = sshll.u32 %s413_s25, 4  ;;  %s42_s28 = sshll.u32 %s414_s27, 4  ;;  %s20_s26 = int_to_ptr.vmem [resolvable:$true] %s19_s26  ;;  %s43_s28 = int_to_ptr.vmem [resolvable:$true] %s42_s28 }
  0x10   :  { %s352_s29 = scalar_lea.vmem %s20_s26, 128  ;;  %p357_p6 = scmp.lt.s32.totalorder %s20_s26, %s20_s26 }
  0x11   :  { %p353_p5 = scmp.ne.s32.totalorder %s20_s26, %s352_s29  ;;  %p358_p7 = scmp.lt.s32.totalorder %s352_s29, %s352_s29 }
  0x13   :  { %p359_p8 = por %p358_p7, %p357_p6 }
  0x15   :  { %p360_p9 = pnand %p359_p8, %p353_p5 }
  0x17   :  { %363 = shalt.err (!%p360_p9)
}
  0x18   :  { %22 = dma.hbm_to_vmem [thread:$0]  %s468_s0, 128, %s20_s26, [#allocation3]  }
  0x19   :  { %s372_s7 = scalar_lea.vmem %s43_s28, 1024  ;;  %p377_p11 = scmp.lt.s32.totalorder %s43_s28, %s43_s28 }
  0x1a   :  { %p373_p10 = scmp.ne.s32.totalorder %s43_s28, %s372_s7  ;;  %p378_p12 = scmp.lt.s32.totalorder %s372_s7, %s372_s7 }
  0x1c   :  { %p379_p13 = por %p378_p12, %p377_p11 }
  0x1e   :  { %p380_p0 = pnand %p379_p13, %p373_p10 }
  0x20   :  { %383 = shalt.err (!%p380_p0)
}
  0x21   :  { %48 = dma.hbm_to_vmem [thread:$0]  %s471_s3, 1024, %s43_s28, [#allocation6], %s411_s21, %s411_s21, %s412_s22  }
  0x22   :  { %404 = dma.done.wait [#allocation3], 128  }
  0x23   :  { %405 = vsyncadd [#allocation3], 4294967168 }
  0x24   :  { %406 = dma.done.wait [#allocation6], 2048  }
  0x25   :  { %407 = vsyncadd [#allocation6], 4294965248  ;;  %v415_v0 = vmov 0.0   ;;  %vm416_vm0 = vmmov 0   ;;  %v68_v1 = vld [vmem:[#allocation5 + $0x38] sm:$0xff]  ;;  %v67_v2 = vld [vmem:[#allocation5 + $0x30] sm:$0xff] }
  0x26   :  { %278 = vmatprep.subr.mxu0 %v415_v0  ;;  %294 = vmatprep.mubr.msk.f32.mxu0 %vm416_vm0, %v415_v0  ;;  %v66_v3 = vld [vmem:[#allocation5 + $0x28] sm:$0xff]  ;;  %v158_v4 = vld [vmem:[#allocation7 + $0x38] sm:$0xff]  ;;  %v157_v5 = vld [vmem:[#allocation7 + $0x30] sm:$0xff]  ;;  %vm76_vm1 = vcmask 523264   ;;  %s417_s11 = smov [#allocation8]  }
  0x27   :  { %297 = vmatprep.subr.mxu1 %v415_v0  ;;  %313 = vmatprep.mubr.msk.f32.mxu1 %vm416_vm0, %v415_v0  ;;  %v65_v6 = vld [vmem:[#allocation5 + $0x20] sm:$0xff]  ;;  %v156_v7 = vld [vmem:[#allocation7 + $0x28] sm:$0xff]  ;;  %v64_v8 = vld [vmem:[#allocation5 + $0x18] sm:$0xff]  ;;  %s246_s12 = sshll.u32 %s417_s11, 4  ;;  %s247_s12 = int_to_ptr.vmem [resolvable:$true] %s246_s12 }
  0x28   :  { %279 = vmatpush3.msra.mxu0 %v68_v1  ;;  %298 = vmatpush3.msra.mxu1 %v158_v4  ;;  %v155_v9 = vld [vmem:[#allocation7 + $0x20] sm:$0xff]  ;;  %v63_v10 = vld [vmem:[#allocation5 + $0x10] sm:$0xff]  ;;  %v154_v11 = vld [vmem:[#allocation7 + $0x18] sm:$0xff]  ;;  %s384_s13 = scalar_lea.vmem %s247_s12, 128  ;;  %p389_p2 = scmp.lt.s32.totalorder %s247_s12, %s247_s12 }
  0x29   :  { %280 = vmatprep.subr.mxu0 %v415_v0  ;;  %299 = vmatprep.subr.mxu1 %v415_v0  ;;  %v62_v12 = vld [vmem:[#allocation5 + $0x8] sm:$0xff]  ;;  %v61_v13 = vld [vmem:[#allocation5] sm:$0xff]  ;;  %v60_v14 = vld [vmem:[#allocation2] sm:$0xff]  ;;  %p385_p1 = scmp.ne.s32.totalorder %s247_s12, %s384_s13  ;;  %p390_p3 = scmp.lt.s32.totalorder %s384_s13, %s384_s13 }
  0x2a   :  { %281 = vmatpush3.msra.mxu0 %v67_v2  ;;  %300 = vmatpush3.msra.mxu1 %v157_v5  ;;  %v153_v15 = vld [vmem:[#allocation7 + $0x10] sm:$0xff]  ;;  %v152_v16 = vld [vmem:[#allocation7 + $0x8] sm:$0xff]  ;;  %v151_v17 = vld [vmem:[#allocation7] sm:$0xff] }
  0x2b   :  { %282 = vmatprep.subr.mxu0 %v415_v0  ;;  %301 = vmatprep.subr.mxu1 %v415_v0  ;;  %v256_v18 = vld [vmem:[%s470_s2] ss:$0 sm:$0xff]  ;;  %p391_p4 = por %p390_p3, %p389_p2 }
  0x2c   :  { %283 = vmatpush3.msra.mxu0 %v66_v3  ;;  %302 = vmatpush3.msra.mxu1 %v156_v7  ;;  %v258_v23 = vld [vmem:[%s472_s4] ss:$0 sm:$0xff] }
  0x2d   :  { %284 = vmatprep.subr.mxu0 %v415_v0  ;;  %303 = vmatprep.subr.mxu1 %v415_v0  ;;  %p392_p5 = pnand %p391_p4, %p385_p1 }
  0x2e   :  { %285 = vmatpush3.msra.mxu0 %v65_v6  ;;  %304 = vmatpush3.msra.mxu1 %v155_v9 }
  0x2f   :  { %286 = vmatprep.subr.mxu0 %v415_v0  ;;  %305 = vmatprep.subr.mxu1 %v415_v0 }
  0x30   :  { %287 = vmatpush3.msra.mxu0 %v64_v8  ;;  %306 = vmatpush3.msra.mxu1 %v154_v11 }
  0x31   :  { %288 = vmatprep.subr.mxu0 %v415_v0  ;;  %307 = vmatprep.subr.mxu1 %v415_v0 }
  0x32   :  { %289 = vmatpush3.msra.mxu0 %v63_v10  ;;  %308 = vmatpush3.msra.mxu1 %v153_v15 }
  0x33   :  { %290 = vmatprep.subr.mxu0 %v415_v0  ;;  %309 = vmatprep.subr.mxu1 %v415_v0 }
  0x34   :  { %291 = vmatpush3.msra.mxu0 %v62_v12  ;;  %310 = vmatpush3.msra.mxu1 %v152_v16 }
  0x35   :  { %292 = vmatprep.subr.mxu0 %v415_v0  ;;  %311 = vmatprep.subr.mxu1 %v415_v0 }
  0x36   :  { %293 = vmatpush3.msra.mxu0 %v61_v13  ;;  %312 = vmatpush3.msra.mxu1 %v151_v17 }
  0x37   :  { %295 = vmatmul.mubr.msk.f32.vlgmr.msra.gmra.mxu0 %vm76_vm1, %v60_v14 }
  0xf7   :  { %v146_v19 = vpop.f32.mrf.mxu0 }
  0xf8   :  { %v147_v20 = vadd.f32 %v256_v18, %v146_v19 }
  0xf9   :  { %v296_v21 = vpop.f32.mrf.mxu0 }
  0xfa   :  { %v150_v22 = vmax.f32 %v147_v20, 0.0 }
  0xfc   :  { %314 = vmatmul.mubr.msk.f32.vlgmr.msra.gmra.mxu1 %vm76_vm1, %v150_v22 }
 0x1bc   :  { %v235_v24 = vpop.f32.mrf.mxu1 }
 0x1bd   :  { %v236_v25 = vadd.f32 %v258_v23, %v235_v24 }
 0x1be   :  { %v315_v26 = vpop.f32.mrf.mxu1 }
 0x1bf   :  { %239 = vst [vmem:[#allocation8] sm:$0xff] %v236_v25 }
 0x1c0   :  { %395 = shalt.err (!%p392_p5)
}
 0x1c1   :  { %249 = dma.vmem_to_hbm [thread:$0]  %s247_s12, 128, %s473_s5, [#allocation4]  }
 0x1c2   :  { %408 = dma.done.wait [#allocation4], 128  }
 0x1c3   :  { %409 = vsyncadd [#allocation4], 4294967168 }
 0x1c4   :  { %253 = vsyncpa [#allocation3], 1 }
 0x1c5   :  { %254 = vsyncpa [#allocation6], 1 }
 0x1c6   :  { %255 = vsyncpa [#allocation4], 1 }

</bundles_post_ra>
